<compile_context>
chip_gen: v7x
topology: tpu7x:2x2x1
jax: 0.10.0
libtpu: 0.0.40
codegen_flags: <defaults>
</compile_context>

<pallas_src>
import functools

import jax
import jax.numpy as jnp
from jax.experimental import pallas as pl
from jax.experimental.pallas import tpu as pltpu

_LANE = 128
_SUB = 8


def _fold_rows(x):
    """Sum an (R, 128) f32 tile down to (8, 128) using only vreg-wise adds."""
    r = x.shape[0]
    rm = (r // _SUB) * _SUB
    acc = None
    if rm:
        acc = jnp.sum(x[:rm].reshape(rm // _SUB, _SUB, _LANE), axis=0)
    if r - rm:  # ragged tail (only when the tile is the full, small row count)
        tail = jnp.sum(x[rm:], axis=0, keepdims=True)              # (1, 128)
        row = jax.lax.broadcasted_iota(jnp.int32, (_SUB, _LANE), 0)
        tail = jnp.where(row == 0, jnp.broadcast_to(tail, (_SUB, _LANE)), 0.0)
        acc = tail if acc is None else acc + tail
    return acc


def _mixloss_kernel(pred_ref, tgt_ref, out_ref, *, hw, needs_mask):
    k = pl.program_id(1)
    C = pred_ref.shape[1]
    tile_rows = tgt_ref.shape[1]

    tgt = tgt_ref[0]                                    # (T, 128) int32
    t_f = tgt.astype(jnp.float32)

    if C == 2:
        # Binary fast path: 1 exp + 1 log + 1 divide + 1 select per pixel.
        x0 = pred_ref[0, 0].astype(jnp.float32)
        x1 = pred_ref[0, 1].astype(jnp.float32)
        d = x1 - x0
        p1 = 1.0 / (1.0 + jnp.exp(-d))                  # softmax(pred)[:, 1]
        z = jnp.where(tgt == 1, -d, d)                  # ce = softplus(z)
        ce_px = jnp.maximum(z, 0.0) + jnp.log(1.0 + jnp.exp(-jnp.abs(z)))
    else:
        # Generic path: class axis is a leading block dim, so max/sum over it
        # are plain elementwise VPU ops on static slices (no one-hot, no XLU).
        xs = [pred_ref[0, c].astype(jnp.float32) for c in range(C)]
        m = xs[0]
        for c in range(1, C):
            m = jnp.maximum(m, xs[c])
        s = None     # sum_c exp(x_c - m)
        z_t = None   # x_target - m, gathered via compare/select
        e1 = None    # exp(x_1 - m)
        for c in range(C):
            z_c = xs[c] - m
            e_c = jnp.exp(z_c)
            s = e_c if s is None else s + e_c
            sel = jnp.where(tgt == c, z_c, 0.0)
            z_t = sel if z_t is None else z_t + sel
            if c == 1:
                e1 = e_c
        ce_px = jnp.log(s) - z_t                        # -log softmax[target]
        # Approx reciprocal (EUP) + one Newton step: cheaper than a full
        # divide, accurate to ~f32 for s in [1, C].
        inv_s = pl.reciprocal(s, approx=True)
        inv_s = inv_s * (2.0 - s * inv_s)
        p1 = e1 * inv_s                                 # softmax(pred)[:, 1]

    def store(valid):
        if valid is None:
            ce, p, t = ce_px, p1, t_f
        else:
            ce = jnp.where(valid, ce_px, 0.0)
            p = jnp.where(valid, p1, 0.0)
            t = jnp.where(valid, t_f, 0.0)
        out_ref[0, 0, 0] = _fold_rows(ce)               # sum CE
        out_ref[0, 0, 1] = _fold_rows(p * t)            # dice numerator
        out_ref[0, 0, 2] = _fold_rows(p)                # sum softmax[:, 1]
        out_ref[0, 0, 3] = _fold_rows(t)                # sum target

    if needs_mask:
        is_last = k == pl.num_programs(1) - 1

        @pl.when(is_last)
        def _():
            row = jax.lax.broadcasted_iota(jnp.int32, tgt.shape, 0)
            col = jax.lax.broadcasted_iota(jnp.int32, tgt.shape, 1)
            gpix = (k * tile_rows + row) * _LANE + col
            store(gpix < hw)

        @pl.when(jnp.logical_not(is_last))
        def _():
            store(None)
    else:
        store(None)


def mix_loss(pred, target, *, alpha=1.0, beta=1.0, smooth=1e-5,
             max_tile_rows=512):
    """pred: [N, C, H, W] float logits; target: [N, H, W] integer class map."""
    # TODO(synk): the optional per-class `weight` argument of F.cross_entropy
    # is not implemented (MixLoss defaults to weight=None).
    N, C, H, W = pred.shape
    assert C >= 2, "MixLoss slices softmax class 1; need C >= 2"
    HW = H * W

    # Stream inputs in (or close to) their native dtypes; upcast in-kernel.
    if pred.dtype not in (jnp.float32, jnp.bfloat16):
        pred = pred.astype(jnp.float32)
    # TODO(synk): stream int8/uint8 target maps directly (min sublane tile 32)
    # instead of casting, to cut ~25% of HBM traffic on v5e when the narrow
    # dtype already exists upstream.
    if target.dtype != jnp.int32:
        target = target.astype(jnp.int32)

    sub = 16 if pred.dtype == jnp.bfloat16 else _SUB    # min sublane multiple
    rows = pl.cdiv(HW, _LANE)

    # Largest spatial tile such that the double-buffered streamed tiles plus
    # ~10 full-tile f32 elementwise temporaries stay well inside scoped VMEM
    # on every generation (v7x: 64 MiB physical / 32 MiB scoped default).
    pred_bytes = pred.dtype.itemsize
    per_row = 2 * _LANE * (C * pred_bytes + 4) + 10 * _LANE * 4
    budget = 16 * 1024 * 1024
    max_rows = min(max_tile_rows, budget // per_row)
    max_rows = max(sub, (max_rows // sub) * sub)

    if rows <= max_rows:
        tile_rows, n_tiles, rows_alloc = rows, 1, rows
    else:
        tile_rows = 0
        d = max_rows
        d_min = max(sub, (max_rows // 2 // sub) * sub)
        while d >= d_min:                               # divisor => no pad
            if rows % d == 0:
                tile_rows = d
                break
            d -= sub
        if tile_rows:
            n_tiles, rows_alloc = rows // tile_rows, rows
        else:
            # Rare fallback: no friendly divisor; pad the row axis so every
            # tile is full and mask the pad in-kernel on the last tile only.
            # TODO(synk): handle the ragged last tile as a partial block to
            # avoid this extra copy of pred for pathological row counts.
            tile_rows = max_rows
            n_tiles = pl.cdiv(rows, tile_rows)
            rows_alloc = n_tiles * tile_rows

    hw_alloc = rows_alloc * _LANE
    needs_mask = hw_alloc != HW

    pred_s = pred.reshape(N, C, HW)                     # free metadata reshape
    tgt_s = target.reshape(N, HW)
    if needs_mask:
        pad = hw_alloc - HW
        pred_s = jnp.pad(pred_s, ((0, 0), (0, 0), (0, pad)))
        tgt_s = jnp.pad(tgt_s, ((0, 0), (0, pad)))
    pred_s = pred_s.reshape(N, C, rows_alloc, _LANE)
    tgt_s = tgt_s.reshape(N, rows_alloc, _LANE)

    kernel = functools.partial(_mixloss_kernel, hw=HW, needs_mask=needs_mask)

    # Tiles are small (<= ~3 MiB); default double-buffering already hides the
    # DMA.  pl.Buffered(3) on pred was considered but left out (<= few %).
    parts = pl.pallas_call(
        kernel,
        out_shape=jax.ShapeDtypeStruct((N, n_tiles, 4, _SUB, _LANE),
                                       jnp.float32),
        grid_spec=pltpu.PrefetchScalarGridSpec(
            num_scalar_prefetch=0,
            grid=(N, n_tiles),
            in_specs=[
                pl.BlockSpec((1, C, tile_rows, _LANE),
                             lambda n, k: (n, 0, k, 0)),
                pl.BlockSpec((1, tile_rows, _LANE),
                             lambda n, k: (n, k, 0)),
            ],
            out_specs=pl.BlockSpec((1, 1, 4, _SUB, _LANE),
                                   lambda n, k: (n, k, 0, 0, 0)),
        ),
        compiler_params=pltpu.CompilerParams(
            dimension_semantics=("parallel", "parallel"),
            vmem_limit_bytes=32 * 1024 * 1024),
    )(pred_s, tgt_s)

    sums = parts.sum(axis=(1, 3, 4))                    # (N, 4)
    ce_sum, num, psum, tsum = sums[:, 0], sums[:, 1], sums[:, 2], sums[:, 3]

    ce = jnp.sum(ce_sum) / float(N * HW)                # mean CE over pixels
    dice = jnp.mean(1.0 - 2.0 * num / (psum + tsum + smooth))
    return alpha * ce + beta * dice


def _mix_loss_ref(pred, target, *, alpha=1.0, beta=1.0, smooth=1e-5):
    """Pure-JAX reference matching the PyTorch MixLoss forward."""
    N = pred.shape[0]
    pred = pred.astype(jnp.float32)
    logp = jax.nn.log_softmax(pred, axis=1)
    ce = -jnp.mean(jnp.take_along_axis(logp, target[:, None, :, :], axis=1))
    p1 = jax.nn.softmax(pred, axis=1)[:, 1, :, :]
    pr = p1.reshape(N, -1)
    tr = target.reshape(N, -1).astype(jnp.float32)
    num = jnp.sum(pr * tr, axis=1)
    den = jnp.sum(pr, axis=1) + jnp.sum(tr, axis=1) + smooth
    dice = jnp.mean(1.0 - 2.0 * num / den)
    return alpha * ce + beta * dice


if __name__ == "__main__":
    base = jax.random.PRNGKey(0)

    # (name, N, C, H, W, pred_dtype, max_tile_rows, tol)
    cases = [
        ("binary_16x16",           2, 2, 16, 16,  jnp.float32,  512, 2e-5),
        ("3class_32x32",           2, 3, 32, 32,  jnp.float32,  512, 1e-3),
        ("multitile_64x64",        1, 2, 64, 64,  jnp.float32,   16, 2e-5),
        ("masked_10x10",           2, 2, 10, 10,  jnp.float32,  512, 2e-5),
        ("multitile_masked",       1, 2, 16, 104, jnp.float32,    8, 2e-5),
        ("bf16_64x64",             1, 2, 64, 64,  jnp.bfloat16, 512, 2e-5),
    ]
    for i, (name, N, C, H, W, pdt, mtr, tol) in enumerate(cases):
        kp, kt = jax.random.split(jax.random.fold_in(base, i))
        pred = (2.0 * jax.random.normal(kp, (N, C, H, W), jnp.float32)).astype(pdt)
        target = jax.random.randint(kt, (N, H, W), 0, C, dtype=jnp.int32)

        out = jax.block_until_ready(mix_loss(pred, target, max_tile_rows=mtr))
        ref = jax.block_until_ready(
            _mix_loss_ref(pred.astype(jnp.float32), target))
        assert jnp.allclose(out, ref, rtol=tol, atol=tol), (name, out, ref)

    print("KERNEL_OK")
</pallas_src>

<mosaic_0001>
module attributes {stable_mosaic.version = 11 : i64} {
  func.func @_mixloss_kernel(%arg0: i32, %arg1: i32, %arg2: memref<1x2x2x128xf32, #tpu.memory_space<vmem>>, %arg3: memref<1x2x128xi32, #tpu.memory_space<vmem>>, %arg4: memref<1x1x4x8x128xf32, #tpu.memory_space<vmem>>) attributes {dimension_semantics = [#tpu.dimension_semantics<parallel>, #tpu.dimension_semantics<parallel>], iteration_bounds = array<i64: 2, 1>, scalar_prefetch = 0 : i64, scratch_operands = 0 : i64, tpu.core_type = #tpu.core_type<tc>, window_params = [{transform_indices = @transform_0, window_bounds = array<i64: 1, 2, 2, 128>}, {transform_indices = @transform_1, window_bounds = array<i64: 1, 2, 128>}, {transform_indices = @transform_2, window_bounds = array<i64: 1, 1, 4, 8, 128>}]} {
    %c0 = arith.constant 0 : index
    %c0_0 = arith.constant 0 : index
    %c0_1 = arith.constant 0 : index
    %0 = vector.load %arg3[%c0, %c0_0, %c0_1] : memref<1x2x128xi32, #tpu.memory_space<vmem>>, vector<1x2x128xi32>
    %1 = vector.shape_cast %0 : vector<1x2x128xi32> to vector<2x128xi32>
    %2 = arith.sitofp %1 : vector<2x128xi32> to vector<2x128xf32>
    %c0_2 = arith.constant 0 : index
    %c0_3 = arith.constant 0 : index
    %c0_4 = arith.constant 0 : index
    %c0_5 = arith.constant 0 : index
    %3 = vector.load %arg2[%c0_2, %c0_3, %c0_4, %c0_5] : memref<1x2x2x128xf32, #tpu.memory_space<vmem>>, vector<1x1x2x128xf32>
    %4 = vector.shape_cast %3 : vector<1x1x2x128xf32> to vector<2x128xf32>
    %c0_6 = arith.constant 0 : index
    %c1 = arith.constant 1 : index
    %c0_7 = arith.constant 0 : index
    %c0_8 = arith.constant 0 : index
    %5 = vector.load %arg2[%c0_6, %c1, %c0_7, %c0_8] : memref<1x2x2x128xf32, #tpu.memory_space<vmem>>, vector<1x1x2x128xf32>
    %6 = vector.shape_cast %5 : vector<1x1x2x128xf32> to vector<2x128xf32>
    %7 = arith.subf %6, %4 : vector<2x128xf32>
    %cst = arith.constant 0.000000e+00 : f32
    %8 = vector.broadcast %cst : f32 to vector<2x128xf32>
    %9 = arith.subf %8, %7 : vector<2x128xf32>
    %10 = math.exp %9 : vector<2x128xf32>
    %cst_9 = arith.constant 1.000000e+00 : f32
    %11 = vector.broadcast %cst_9 : f32 to vector<2x128xf32>
    %12 = arith.addf %11, %10 : vector<2x128xf32>
    %cst_10 = arith.constant 1.000000e+00 : f32
    %13 = vector.broadcast %cst_10 : f32 to vector<2x128xf32>
    %14 = arith.divf %13, %12 : vector<2x128xf32>
    %c1_i32 = arith.constant 1 : i32
    %15 = vector.broadcast %c1_i32 : i32 to vector<2x128xi32>
    %16 = arith.cmpi eq, %1, %15 : vector<2x128xi32>
    %cst_11 = arith.constant 0.000000e+00 : f32
    %17 = vector.broadcast %cst_11 : f32 to vector<2x128xf32>
    %18 = arith.subf %17, %7 : vector<2x128xf32>
    %19 = arith.select %16, %18, %7 : vector<2x128xi1>, vector<2x128xf32>
    %cst_12 = arith.constant 0.000000e+00 : f32
    %20 = vector.broadcast %cst_12 : f32 to vector<2x128xf32>
    %21 = arith.maximumf %19, %20 : vector<2x128xf32>
    %22 = math.absf %19 : vector<2x128xf32>
    %cst_13 = arith.constant 0.000000e+00 : f32
    %23 = vector.broadcast %cst_13 : f32 to vector<2x128xf32>
    %24 = arith.subf %23, %22 : vector<2x128xf32>
    %25 = math.exp %24 : vector<2x128xf32>
    %cst_14 = arith.constant 1.000000e+00 : f32
    %26 = vector.broadcast %cst_14 : f32 to vector<2x128xf32>
    %27 = arith.addf %26, %25 : vector<2x128xf32>
    %28 = math.log %27 : vector<2x128xf32>
    %29 = arith.addf %21, %28 : vector<2x128xf32>
    %cst_15 = arith.constant dense<0.000000e+00> : vector<128xf32>
    %30 = vector.multi_reduction <add>, %29, %cst_15 [0] : vector<2x128xf32> to vector<128xf32>
    %31 = vector.shape_cast %30 : vector<128xf32> to vector<1x128xf32>
    %32 = tpu.iota {dimensions = array<i32: 0>} : vector<8x128xi32>
    %c0_i32 = arith.constant 0 : i32
    %33 = vector.broadcast %c0_i32 : i32 to vector<8x128xi32>
    %34 = arith.cmpi eq, %32, %33 : vector<8x128xi32>
    %35 = vector.shape_cast %31 : vector<1x128xf32> to vector<1x128xf32>
    %36 = vector.broadcast %35 : vector<1x128xf32> to vector<8x128xf32>
    %cst_16 = arith.constant 0.000000e+00 : f32
    %37 = vector.broadcast %cst_16 : f32 to vector<8x128xf32>
    %38 = arith.select %34, %36, %37 : vector<8x128xi1>, vector<8x128xf32>
    %c0_17 = arith.constant 0 : index
    %c0_18 = arith.constant 0 : index
    %c0_19 = arith.constant 0 : index
    %c0_20 = arith.constant 0 : index
    %c0_21 = arith.constant 0 : index
    %39 = vector.load %arg4[%c0_17, %c0_18, %c0_19, %c0_20, %c0_21] : memref<1x1x4x8x128xf32, #tpu.memory_space<vmem>>, vector<1x1x1x8x128xf32>
    %40 = vector.shape_cast %39 : vector<1x1x1x8x128xf32> to vector<8x128xf32>
    %41 = vector.shape_cast %38 : vector<8x128xf32> to vector<1x1x1x8x128xf32>
    tpu.vector_store %arg4[%c0_17, %c0_18, %c0_19, %c0_20, %c0_21], %41 {strides = array<i32>} : memref<1x1x4x8x128xf32, #tpu.memory_space<vmem>>, vector<1x1x1x8x128xf32>,
    %42 = arith.mulf %14, %2 : vector<2x128xf32>
    %cst_22 = arith.constant dense<0.000000e+00> : vector<128xf32>
    %43 = vector.multi_reduction <add>, %42, %cst_22 [0] : vector<2x128xf32> to vector<128xf32>
    %44 = vector.shape_cast %43 : vector<128xf32> to vector<1x128xf32>
    %45 = tpu.iota {dimensions = array<i32: 0>} : vector<8x128xi32>
    %c0_i32_23 = arith.constant 0 : i32
    %46 = vector.broadcast %c0_i32_23 : i32 to vector<8x128xi32>
    %47 = arith.cmpi eq, %45, %46 : vector<8x128xi32>
    %48 = vector.shape_cast %44 : vector<1x128xf32> to vector<1x128xf32>
    %49 = vector.broadcast %48 : vector<1x128xf32> to vector<8x128xf32>
    %cst_24 = arith.constant 0.000000e+00 : f32
    %50 = vector.broadcast %cst_24 : f32 to vector<8x128xf32>
    %51 = arith.select %47, %49, %50 : vector<8x128xi1>, vector<8x128xf32>
    %c0_25 = arith.constant 0 : index
    %c0_26 = arith.constant 0 : index
    %c1_27 = arith.constant 1 : index
    %c0_28 = arith.constant 0 : index
    %c0_29 = arith.constant 0 : index
    %52 = vector.load %arg4[%c0_25, %c0_26, %c1_27, %c0_28, %c0_29] : memref<1x1x4x8x128xf32, #tpu.memory_space<vmem>>, vector<1x1x1x8x128xf32>
    %53 = vector.shape_cast %52 : vector<1x1x1x8x128xf32> to vector<8x128xf32>
    %54 = vector.shape_cast %51 : vector<8x128xf32> to vector<1x1x1x8x128xf32>
    tpu.vector_store %arg4[%c0_25, %c0_26, %c1_27, %c0_28, %c0_29], %54 {strides = array<i32>} : memref<1x1x4x8x128xf32, #tpu.memory_space<vmem>>, vector<1x1x1x8x128xf32>,
    %cst_30 = arith.constant dense<0.000000e+00> : vector<128xf32>
    %55 = vector.multi_reduction <add>, %14, %cst_30 [0] : vector<2x128xf32> to vector<128xf32>
    %56 = vector.shape_cast %55 : vector<128xf32> to vector<1x128xf32>
    %57 = tpu.iota {dimensions = array<i32: 0>} : vector<8x128xi32>
    %c0_i32_31 = arith.constant 0 : i32
    %58 = vector.broadcast %c0_i32_31 : i32 to vector<8x128xi32>
    %59 = arith.cmpi eq, %57, %58 : vector<8x128xi32>
    %60 = vector.shape_cast %56 : vector<1x128xf32> to vector<1x128xf32>
    %61 = vector.broadcast %60 : vector<1x128xf32> to vector<8x128xf32>
    %cst_32 = arith.constant 0.000000e+00 : f32
    %62 = vector.broadcast %cst_32 : f32 to vector<8x128xf32>
    %63 = arith.select %59, %61, %62 : vector<8x128xi1>, vector<8x128xf32>
    %c0_33 = arith.constant 0 : index
    %c0_34 = arith.constant 0 : index
    %c2 = arith.constant 2 : index
    %c0_35 = arith.constant 0 : index
    %c0_36 = arith.constant 0 : index
    %64 = vector.load %arg4[%c0_33, %c0_34, %c2, %c0_35, %c0_36] : memref<1x1x4x8x128xf32, #tpu.memory_space<vmem>>, vector<1x1x1x8x128xf32>
    %65 = vector.shape_cast %64 : vector<1x1x1x8x128xf32> to vector<8x128xf32>
    %66 = vector.shape_cast %63 : vector<8x128xf32> to vector<1x1x1x8x128xf32>
    tpu.vector_store %arg4[%c0_33, %c0_34, %c2, %c0_35, %c0_36], %66 {strides = array<i32>} : memref<1x1x4x8x128xf32, #tpu.memory_space<vmem>>, vector<1x1x1x8x128xf32>,
    %cst_37 = arith.constant dense<0.000000e+00> : vector<128xf32>
    %67 = vector.multi_reduction <add>, %2, %cst_37 [0] : vector<2x128xf32> to vector<128xf32>
    %68 = vector.shape_cast %67 : vector<128xf32> to vector<1x128xf32>
    %69 = tpu.iota {dimensions = array<i32: 0>} : vector<8x128xi32>
    %c0_i32_38 = arith.constant 0 : i32
    %70 = vector.broadcast %c0_i32_38 : i32 to vector<8x128xi32>
    %71 = arith.cmpi eq, %69, %70 : vector<8x128xi32>
    %72 = vector.shape_cast %68 : vector<1x128xf32> to vector<1x128xf32>
    %73 = vector.broadcast %72 : vector<1x128xf32> to vector<8x128xf32>
    %cst_39 = arith.constant 0.000000e+00 : f32
    %74 = vector.broadcast %cst_39 : f32 to vector<8x128xf32>
    %75 = arith.select %71, %73, %74 : vector<8x128xi1>, vector<8x128xf32>
    %c0_40 = arith.constant 0 : index
    %c0_41 = arith.constant 0 : index
    %c3 = arith.constant 3 : index
    %c0_42 = arith.constant 0 : index
    %c0_43 = arith.constant 0 : index
    %76 = vector.load %arg4[%c0_40, %c0_41, %c3, %c0_42, %c0_43] : memref<1x1x4x8x128xf32, #tpu.memory_space<vmem>>, vector<1x1x1x8x128xf32>
    %77 = vector.shape_cast %76 : vector<1x1x1x8x128xf32> to vector<8x128xf32>
    %78 = vector.shape_cast %75 : vector<8x128xf32> to vector<1x1x1x8x128xf32>
    tpu.vector_store %arg4[%c0_40, %c0_41, %c3, %c0_42, %c0_43], %78 {strides = array<i32>} : memref<1x1x4x8x128xf32, #tpu.memory_space<vmem>>, vector<1x1x1x8x128xf32>,
    return
  }
  func.func @transform_0(%arg0: i32, %arg1: i32) -> (i32, i32, i32, i32) {
    %c0_i32 = arith.constant 0 : i32
    %c0_i32_0 = arith.constant 0 : i32
    %c0_i32_1 = arith.constant 0 : i32
    return %arg0, %c0_i32, %arg1, %c0_i32_0 : i32, i32, i32, i32
  }
  func.func @transform_1(%arg0: i32, %arg1: i32) -> (i32, i32, i32) {
    %c0_i32 = arith.constant 0 : i32
    %c0_i32_0 = arith.constant 0 : i32
    return %arg0, %arg1, %c0_i32 : i32, i32, i32
  }
  func.func @transform_2(%arg0: i32, %arg1: i32) -> (i32, i32, i32, i32, i32) {
    %c0_i32 = arith.constant 0 : i32
    %c0_i32_0 = arith.constant 0 : i32
    %c0_i32_1 = arith.constant 0 : i32
    %c0_i32_2 = arith.constant 0 : i32
    return %arg0, %arg1, %c0_i32, %c0_i32_0, %c0_i32_1 : i32, i32, i32, i32, i32
  }
}

</mosaic_0001>

<bundles_post_ra>
// kernel: tpu_custom_call.1
= control target key start
LH: loop header
LB: loop body
LE: loop exit
PB: predicated region body
PF: predicated region fallthrough
CT: control target
= control target key end

     0   :  { %7 = vsyncpa [#allocation3], 0  ;;  %s918_s0 = inlined_call_operand.hbm [shape: f32[2,2,2,128], index: 0, kind: input, shape index: {}]   ;;  %s919_s1 = inlined_call_operand.hbm [shape: s32[2,2,128], index: 1, kind: input, shape index: {}]   ;;  %s920_s2 = inlined_call_operand.hbm [shape: f32[2,1,4,8,128], index: 2, kind: output, shape index: {}]  }
   0x1   :  { %9 = vsyncpa [#allocation3 + $0x1], 0 }
   0x2   :  { %10 = vsyncpa [#allocation6], 0 }
   0x3   :  { %12 = vsyncpa [#allocation6 + $0x1], 0 }
   0x4   :  { %13 = vsyncpa [#allocation4], 0 }
   0x5   :  { %15 = vsyncpa [#allocation4 + $0x1], 0  ;;  %s685_s9 = smov 0   ;;  %s687_s10 = smov 0  }
   0x6   :  { %s689_s11 = smov 0   ;;  %s691_s12 = smov 0  }
   0x7   :  { %s693_s13 = smov 0   ;;  %s695_s14 = smov 0  }
   0x8 LB: > { %s412_s15 = sadd.s32 4294967295, %s661_s14   ;;  %s413_s16 = sadd.s32 4294967294, %s661_s14   ;;  %s661_s14 = sphi %s695_s14, %s21_s14   ;;  %s657_s13 = sphi %s693_s13, %s939_s13   ;;  %s653_s12 = sphi %s691_s12, %s938_s12   ;;  %s649_s11 = sphi %s689_s11, %s937_s11   ;;  %s645_s10 = sphi %s687_s10, %s936_s10   ;;  %s641_s9 = sphi %s685_s9, %s935_s9  }
   0x9   : > { %s33_s17 = sadd.s32 1, %s657_s13  ;;  %s42_s18 = sadd.s32 1, %s649_s11 }
   0xa   : > { %p35_p0 = scmp.ge.s32.totalorder %s33_s17, 2  ;;  %p49_p1 = scmp.ne.s32.totalorder %s649_s11, %s645_s10 }
   0xb   : > { %p50_p2 = scmp.eq.s32.totalorder %s661_s14, 0  ;;  %p55_p3 = scmp.ne.s32.totalorder %s645_s10, %s641_s9 }
   0xc   : > { %s941_s17 = smov (%p35_p0, %s33_s17), 0  ;;  %p56_p5 = scmp.eq.s32.totalorder %s412_s15, 0 }
   0xd   : > { %p726_p4 = por %p50_p2, %p49_p1  ;;  %s37_s20 = ssub.s32 %s657_s13, %s941_s17 }
   0xe   : > { %p109_p6 = scmp.eq.s32.totalorder %s412_s15, 1  ;;  %p40_p7 = scmp.eq.s32.totalorder %s37_s20, 0 }
   0xf   : > { %p732_p8 = por %p56_p5, %p55_p3  ;;  %p115_p10 = scmp.eq.s32.totalorder %s413_s16, 1 }
  0x10   : > { %p736_p9 = por %p109_p6, %p49_p1  ;;  %p453_p13 = scmp.lt.s32.totalorder %s661_s14, 2 }
  0x11   : > { %s924_s21 = scalar_select %p732_p8, 1, 0 }
  0x12   : > { %s925_s22 = scalar_select %p736_p9, 1, 0 }
  0x13   : > { %s741_s23 = scalar_select %p40_p7, %s649_s11, %s42_s18  }
  0x14   : > { %p743_p11 = por %p115_p10, %p55_p3  ;;  %s750_s25 = sand.u32 1, %s649_s11  }
  0x15   : > { %s416_s26 = sshll.u32 %s750_s25, 2  ;;  %s434_s27 = sshll.u32 %s657_s13, 6 }
  0x16   : > { %s926_s24 = scalar_select %p743_p11, 1, 0 }
  0x17   : > { %s757_s30 = scalar_lea.hbm %s918_s0, %s434_s27  ;;  %s139_s3 = scalar_lea.vmem [#allocation2], %s416_s26 }
  0x18   : > { %s147_s4 = sshll.u32 %s139_s3, 4  ;;  %p763_p0 = pnand %p453_p13, %p726_p4  ;;  %s759_s4 = int_to_ptr.vmem [resolvable:$true] %s147_s4 }
  0x19   : > { %s136_s6 = scalar_lea.sflag [#allocation3], %s750_s25  ;;  %s515_s7 = scalar_lea.hbm %s757_s30, 64 }
  0x1a   : > { %p516_p2 = scmp.ne.s32.totalorder %s757_s30, %s515_s7  ;;  %p517_p3 = pneg %p763_p0 }
  0x1b   : > { %s520_s16 = scalar_lea.hbm %s918_s0, 128  ;;  %p521_p4 = scmp.lt.u32.totalorder %s757_s30, %s918_s0 }
  0x1c   : > { %p518_p5 = pnand %p517_p3, %p516_p2  ;;  %p522_p7 = scmp.lt.u32.totalorder %s520_s16, %s515_s7 }
  0x1d   : > { %p524_p13 = scmp.lt.u32.totalorder %s515_s7, %s757_s30 }
  0x1e   : > { %p519_p6 = pneg %p518_p5  ;;  %p523_p10 = por %p522_p7, %p521_p4 }
  0x20   : > { %p525_p12 = por %p524_p13, %p523_p10 }
  0x22   : > { %p526_p1 = pnand %p525_p12, %p519_p6 }
  0x24   : > { %529 = shalt.err (!%p526_p1)
}
  0x25   : > { %s530_s20 = scalar_lea.vmem %s759_s4, 64  ;;  %s663_s26 = smov [#allocation2]  }
  0x26   : > { %p531_p2 = scmp.ne.s32.totalorder %s759_s4, %s530_s20  ;;  %s535_s27 = sshll.u32 %s663_s26, 4  ;;  %s536_s27 = int_to_ptr.vmem [resolvable:$false] %s535_s27 }
  0x27   : > { %s537_s28 = scalar_lea.vmem %s536_s27, 128  ;;  %p538_p9 = scmp.lt.s32.totalorder %s759_s4, %s536_s27 }
  0x28   : > { %p533_p5 = pnand %p531_p2, %p517_p3  ;;  %p539_p4 = scmp.lt.s32.totalorder %s537_s28, %s530_s20 }
  0x2a   : > { %p534_p11 = pneg %p533_p5  ;;  %p540_p7 = por %p539_p4, %p538_p9 }
  0x2c   : > { %p541_p10 = pnand %p540_p7, %p534_p11 }
  0x2e   : > { %544 = shalt.err (!%p541_p10)
}
  0x2f   : > { %s664_s29 = smov 32   ;;  %s665_s3 = smov 2  }
  0x30   : > { %445 = dma.hbm_to_vmem [thread:$0]  (!%p763_p0), %s757_s30, 64, %s759_s4, %s136_s6, %s664_s29, %s664_s29, %s665_s3  }
  0x31   : > { %p174_p12 = scmp.lt.s32.totalorder %s661_s14, 3  ;;  %s419_s7 = sshll.u32 %s750_s25, 1 }
  0x32   : > { %s420_s8 = sshll.u32 %s657_s13, 5  ;;  %p928_p9 = scmp.ge.s32.totalorder %s661_s14, 1 }
  0x33   : > { %s808_s19 = scalar_lea.hbm %s919_s1, %s420_s8  ;;  %s161_s20 = scalar_lea.vmem [#allocation5], %s419_s7 }
  0x34   : > { %p801_p11 = pnand %p928_p9, %p174_p12  ;;  %s169_s26 = sshll.u32 %s161_s20, 4  ;;  %s170_s26 = int_to_ptr.vmem [resolvable:$true] %s169_s26 }
  0x35   : > { %s158_s30 = scalar_lea.sflag [#allocation6], %s750_s25  ;;  %s545_s4 = scalar_lea.hbm %s808_s19, 32 }
  0x36   : > { %s929_s15 = scalar_select %p801_p11, 1, 0 }
  0x37   : > { %p546_p1 = scmp.ne.s32.totalorder %s808_s19, %s545_s4  ;;  %s550_s28 = scalar_lea.hbm %s919_s1, 64 }
  0x38   : > { %p551_p2 = scmp.lt.u32.totalorder %s808_s19, %s919_s1  ;;  %p552_p5 = scmp.lt.u32.totalorder %s550_s28, %s545_s4 }
  0x39   : > { %p548_p6 = pnand %p546_p1, %p517_p3  ;;  %p554_p7 = scmp.lt.u32.totalorder %s545_s4, %s808_s19 }
  0x3a   : > { %p553_p4 = por %p552_p5, %p551_p2 }
  0x3b   : > { %p549_p13 = pneg %p548_p6 }
  0x3c   : > { %p555_p10 = por %p554_p7, %p553_p4 }
  0x3e   : > { %p556_p12 = pnand %p555_p10, %p549_p13 }
  0x40   : > { %559 = shalt.err (!%p556_p12)
}
  0x41   : > { %s560_s25 = scalar_lea.vmem %s170_s26, 32  ;;  %s666_s7 = smov [#allocation5]  }
  0x42   : > { %p561_p9 = scmp.ne.s32.totalorder %s170_s26, %s560_s25  ;;  %s565_s8 = sshll.u32 %s666_s7, 4  ;;  %s566_s8 = int_to_ptr.vmem [resolvable:$false] %s565_s8 }
  0x43   : > { %s567_s16 = scalar_lea.vmem %s566_s8, 64  ;;  %p568_p8 = scmp.lt.s32.totalorder %s170_s26, %s566_s8 }
  0x44   : > { %p563_p1 = pnand %p561_p9, %p517_p3  ;;  %p569_p11 = scmp.lt.s32.totalorder %s567_s16, %s560_s25 }
  0x46   : > { %p564_p6 = pneg %p563_p1  ;;  %p570_p2 = por %p569_p11, %p568_p8 }
  0x48   : > { %p571_p5 = pnand %p570_p2, %p564_p6 }
  0x4a   : > { %574 = shalt.err (!%p571_p5)
}
  0x4b   : > { %448 = dma.hbm_to_vmem [thread:$0]  (!%p763_p0), %s808_s19, 32, %s170_s26, %s158_s30  }
  0x4c   : > { %p930_p13 = scmp.ne.s32.totalorder %s929_s15, 0 }
  0x4d   : > { %s833_s18 = sand.u32 (!%p930_p13), 1, %s645_s10   ;;  %p931_p3 = scmp.ne.s32.totalorder (!%p930_p13), %s924_s21, 0 }
  0x4e   : > { %178 = sbr.rel (%p930_p13) target bundleno = 159 (0x9f), region = 28  ;;  %s422_s20 = sshll.u32 (!%p930_p13), %s833_s18, 2 }
  0x4f   : > { %s181_s4 = scalar_lea.sflag (!%p930_p13), [#allocation3], %s833_s18  ;;  %s184_s6 = scalar_lea.vmem (!%p930_p13), [#allocation2], %s422_s20 }
  0x55   : > { %628 = dma.done.wait (%p931_p3), %s181_s4, 64  }
  0x56   : > { %630 = vsyncadd (%p931_p3), %s181_s4, 4294967232  ;;  %s423_s5 = sshll.u32 %s833_s18, 1  ;;  %s190_s15 = scalar_lea.sflag [#allocation6], %s833_s18 }
  0x57   : > { %s193_s19 = scalar_lea.vmem [#allocation5], %s423_s5 }
  0x58   : > { %632 = dma.done.wait (%p931_p3), %s190_s15, 32  }
  0x59   : > { %634 = vsyncadd (%p931_p3), %s190_s15, 4294967264  ;;  %vm242_vm0 = vcmask 1041408   ;;  %v219_v0 = vld [vmem:[%s193_s19] sm:$0x3]  ;;  %v221_v1 = vld [vmem:[%s184_s6] sm:$0x3]  ;;  %v250_v10 = vlaneseq }
  0x5a   : > { %v425_v2 = vld [vmem:[%s184_s6 + $0x2] sm:$0x3]  ;;  %v220_v4 = vcvt.s32.f32 %v219_v0  ;;  %vm231_vm1 = vcmp.eq.s32.totalorder %v219_v0, 1  ;;  %s424_s21 = sshll.u32 %s833_s18, 5  ;;  %s435_s27 = sshll.u32 %s653_s12, 9 }
  0x5b   : > { %v224_v3 = vsub.f32 %v425_v2, %v221_v1  ;;  %v251_v15 = vshrl.u32 %v250_v10, 7  ;;  %s850_s26 = scalar_lea.vmem [#allocation7], %s424_s21  ;;  %s867_s3 = scalar_lea.hbm %s920_s2, %s435_s27 }
  0x5c   : > { %v276_v6 = vsel %vm242_vm0, %v220_v4, 0.0  ;;  %s302_s30 = sshll.u32 %s850_s26, 4  ;;  %s287_s25 = scalar_lea.sflag [#allocation4], %s833_s18  ;;  %s862_s30 = int_to_ptr.vmem [resolvable:$true] %s302_s30 }
  0x5d   : > { %v225_v5 = vsub.f32 0.0, %v224_v3  ;;  %v277_v7 = vrot.slane %v276_v6, 4  ;;  %vm252_vm2 = vcmp.eq.s32.totalorder %v251_v15, 0  ;;  %s575_s7 = scalar_lea.vmem %s862_s30, 512  ;;  %p932_p0 = scmp.ne.s32.totalorder %s925_s22, 0 }
  0x5e   : > { %p576_p8 = scmp.ne.s32.totalorder %s862_s30, %s575_s7  ;;  %s667_s12 = smov [#allocation7]  }
  0x5f   : > { %v226_v8 = vmul.f32 1.442695, %v225_v5  ;;  %v232_v9 = vsel %vm231_vm1, %v225_v5, %v224_v3  ;;  %v278_v12 = vadd.f32 %v277_v7, %v276_v6  ;;  %s579_s8 = sshll.u32 %s667_s12, 4  ;;  %s580_s8 = int_to_ptr.vmem [resolvable:$false] %s579_s8 }
  0x60   : > { %v234_v11 = vand.u32 2147483647, %v232_v9  ;;  %v233_v30 = vmax.f32 %v232_v9, 0.0  ;;  %p577_p11 = pnand %p576_p8, %p932_p0  ;;  %s581_s16 = scalar_lea.vmem %s580_s8, 1024 }
  0x61   : > { %507 = vpow2.f32 %v226_v8  ;;  %v279_v14 = vrot.slane %v278_v12, 2  ;;  %p582_p7 = scmp.lt.s32.totalorder %s862_s30, %s580_s8  ;;  %p583_p10 = scmp.lt.s32.totalorder %s581_s16, %s575_s7 }
  0x62   : > { %v235_v13 = vsub.f32 0.0, %v234_v11  ;;  %p578_p4 = pneg %p577_p11 }
  0x63   : > { %v280_v17 = vadd.f32 %v279_v14, %v278_v12  ;;  %p584_p12 = por %p583_p10, %p582_p7 }
  0x64   : > { %v236_v16 = vmul.f32 1.442695, %v235_v13 }
  0x65   : > { %v281_v18 = vrot.slane %v280_v17, 1  ;;  %p585_p9 = pnand %p584_p12, %p578_p4 }
  0x66   : > { %509 = vpow2.f32 %v236_v16 }
  0x67   : > { %v282_v19 = vadd.f32 %v281_v18, %v280_v17 }
  0x69   : > { %v283_v20 = vsel %vm252_vm2, %v282_v19, 0.0 }
  0x6a   : > { %428 = vst [vmem:[%s850_s26 + $0x18] sm:$0xff] %v283_v20 }
  0x6b   : > { %v508_v21 = vpop.eup %507 }
  0x6c   : > { %v228_v22 = vadd.f32 1.0, %v508_v21 }
  0x6e   : > { %511 = vrcp.f32 %v228_v22 }
  0x70   : > { %v510_v23 = vpop.eup %509 }
  0x71   : > { %v238_v24 = vadd.f32 1.0, %v510_v23 }
  0x73   : > { %513 = vlog2.f32 %v238_v24 }
  0x78   : > { %v512_v25 = vpop.eup %511 }
  0x79   : > { %v255_v26 = vmul.f32 %v512_v25, %v220_v4  ;;  %v266_v27 = vsel %vm242_vm0, %v512_v25, 0.0 }
  0x7a   : > { %v267_v28 = vrot.slane %v266_v27, 4 }
  0x7b   : > { %v256_v29 = vsel %vm242_vm0, %v255_v26, 0.0 }
  0x7c   : > { %v257_v31 = vrot.slane %v256_v29, 4  ;;  %v268_v32 = vadd.f32 %v267_v28, %v266_v27 }
  0x7d   : > { %v514_v33 = vpop.eup %513 }
  0x7e   : > { %v240_v34 = vmul.f32 0.6931472, %v514_v33  ;;  %v258_v35 = vadd.f32 %v257_v31, %v256_v29  ;;  %v269_v36 = vrot.slane %v268_v32, 2 }
  0x80   : > { %v241_v37 = vadd.f32 %v240_v34, %v233_v30  ;;  %v259_v38 = vrot.slane %v258_v35, 2  ;;  %v270_v39 = vadd.f32 %v269_v36, %v268_v32 }
  0x82   : > { %v243_v40 = vsel %vm242_vm0, %v241_v37, 0.0  ;;  %v260_v41 = vadd.f32 %v259_v38, %v258_v35  ;;  %v271_v42 = vrot.slane %v270_v39, 1 }
  0x83   : > { %v244_v43 = vrot.slane %v243_v40, 4 }
  0x84   : > { %v261_v44 = vrot.slane %v260_v41, 1  ;;  %v272_v45 = vadd.f32 %v271_v42, %v270_v39 }
  0x85   : > { %v245_v46 = vadd.f32 %v244_v43, %v243_v40 }
  0x86   : > { %v262_v47 = vadd.f32 %v261_v44, %v260_v41  ;;  %v273_v48 = vsel %vm252_vm2, %v272_v45, 0.0 }
  0x87   : > { %v246_v49 = vrot.slane %v245_v46, 2  ;;  %427 = vst [vmem:[%s850_s26 + $0x10] sm:$0xff] %v273_v48 }
  0x88   : > { %v263_v50 = vsel %vm252_vm2, %v262_v47, 0.0 }
  0x89   : > { %v247_v51 = vadd.f32 %v246_v49, %v245_v46  ;;  %426 = vst [vmem:[%s850_s26 + $0x8] sm:$0xff] %v263_v50 }
  0x8b   : > { %v248_v52 = vrot.slane %v247_v51, 1 }
  0x8d   : > { %v249_v53 = vadd.f32 %v248_v52, %v247_v51 }
  0x8f   : > { %v253_v54 = vsel %vm252_vm2, %v249_v53, 0.0 }
  0x90   : > { %254 = vst [vmem:[%s850_s26] sm:$0xff] %v253_v54 }
  0x91   : > { %588 = shalt.err (!%p585_p9)
}
  0x92   : > { %s589_s20 = scalar_lea.hbm %s867_s3, 512  ;;  %s593_s5 = scalar_lea.hbm %s920_s2, 1024 }
  0x93   : > { %p590_p1 = scmp.ne.s32.totalorder %s867_s3, %s589_s20  ;;  %p594_p5 = scmp.lt.u32.totalorder %s867_s3, %s920_s2 }
  0x94   : > { %p595_p13 = scmp.lt.u32.totalorder %s593_s5, %s589_s20  ;;  %p597_p8 = scmp.lt.u32.totalorder %s589_s20, %s867_s3 }
  0x95   : > { %p591_p6 = pnand %p590_p1, %p932_p0 }
  0x96   : > { %p596_p3 = por %p595_p13, %p594_p5 }
  0x97   : > { %p592_p2 = pneg %p591_p6 }
  0x98   : > { %p598_p11 = por %p597_p8, %p596_p3 }
  0x9a   : > { %p599_p4 = pnand %p598_p11, %p592_p2 }
  0x9c   : > { %602 = shalt.err (!%p599_p4)
}
  0x9d   : > { %s668_s21 = smov 128   ;;  %s669_s26 = smov 8  }
  0x9e   : > { %440 = dma.vmem_to_hbm [thread:$0]  (%p932_p0), %s862_s30, 512, %s867_s3, %s287_s25, %s668_s21, %s668_s21, %s669_s26  }
  0x9f PF: > { %s317_s27 = sand.u32 1, %s641_s9   ;;  %p933_p7 = scmp.ne.s32.totalorder %s926_s24, 0 }
  0xa0   : > { %p934_p10 = scmp.ge.s32.totalorder %s661_s14, 2  ;;  %s318_s28 = scalar_lea.sflag [#allocation4], %s317_s27 }
  0xa2   : > { %p450_p12 = pnand %p934_p10, %p933_p7 }
  0xa4   : > { %636 = dma.done.wait (!%p450_p12), %s318_s28, 512  }
  0xa5   : > { %638 = vsyncadd (!%p450_p12), %s318_s28, 4294966784  ;;  %s21_s14 = sadd.s32 1, %s661_s14   ;;  %s935_s9 = smov %s645_s10 }
  0xa6   : > { %p18_p9 = scmp.ge.s32.totalorder %s21_s14, 4   ;;  %s936_s10 = smov %s649_s11 }
  0xa7   : > { %s937_s11 = smov %s741_s23  ;;  %s938_s12 = smov %s657_s13 }
  0xa8   : > { %s939_s13 = smov %s941_s17  ;;  %20 = sbr.rel (!%p18_p9) target bundleno = 8 (0x8), region = 90 }
  0xaf   :  { %323 = vsyncpa [#allocation3], 1 }
  0xb0   :  { %325 = vsyncpa [#allocation3 + $0x1], 1 }
  0xb1   :  { %326 = vsyncpa [#allocation6], 1 }
  0xb2   :  { %328 = vsyncpa [#allocation6 + $0x1], 1 }
  0xb3   :  { %329 = vsyncpa [#allocation4], 1 }
  0xb4   :  { %331 = vsyncpa [#allocation4 + $0x1], 1 }

</bundles_post_ra>
